<compile_context>
chip_gen: v7x
topology: tpu7x:2x2x1
jax: 0.10.0
libtpu: 0.0.40
codegen_flags: <defaults>
</compile_context>

<pallas_src>
import functools

import jax
import jax.numpy as jnp
from jax.experimental import pallas as pl
from jax.experimental.pallas import tpu as pltpu


# ----------------------------------------------------------------------------
# Helpers
# ----------------------------------------------------------------------------
def _round_up(x, m):
    return ((x + m - 1) // m) * m


@functools.lru_cache(maxsize=None)
def _vmem_capacity_bytes():
    try:
        info = pltpu.get_tpu_info()
        cap = getattr(info, "vmem_capacity_bytes", None)
        if cap:
            return int(cap)
    except Exception:
        pass
    return 64 * 1024 * 1024  # conservative default (v7x per-TensorCore)


# ----------------------------------------------------------------------------
# Kernels
# ----------------------------------------------------------------------------
def _basic_block_kernel(x_ref, w_ref, b_ref, o_ref):
    # x_ref: (bm, dim_in)  w_ref: (dim_in, bn)  b_ref: (1, bn)  o_ref: (bm, bn)
    acc = jnp.dot(x_ref[...], w_ref[...], preferred_element_type=jnp.float32)
    o_ref[...] = jnp.maximum(acc + b_ref[...], 0.0).astype(o_ref.dtype)


def _basic_block_kernel_ktiled(x_ref, w_ref, b_ref, o_ref, acc_ref):
    # Grid = (m, n, k) with k last ("arbitrary"); acc_ref: (bm, bn) f32 scratch.
    k = pl.program_id(2)

    @pl.when(k == 0)
    def _():
        acc_ref[...] = jnp.zeros_like(acc_ref)

    acc_ref[...] += jnp.dot(x_ref[...], w_ref[...],
                            preferred_element_type=jnp.float32)

    @pl.when(k == pl.num_programs(2) - 1)
    def _():
        o_ref[...] = jnp.maximum(acc_ref[...] + b_ref[...],
                                 0.0).astype(o_ref.dtype)


# ----------------------------------------------------------------------------
# Wrapper
# ----------------------------------------------------------------------------
@functools.partial(
    jax.jit,
    static_argnames=("block_m_cap", "block_n_cap", "keep_padded_output",
                     "force_k_tiling"))
def basic_block_forward(x, w_t, b, *, block_m_cap=None, block_n_cap=None,
                        keep_padded_output=False, force_k_tiling=False):
    """relu(x @ w_t + b) via a Pallas TPU kernel.

    x:   [B, dim_in]        f32 or bf16 (keep activations bf16 end-to-end for
                            the v6e/v7x MXU fast path; do NOT cast per call)
    w_t: [dim_in, dim_out]  transposed nn.Linear weight (store bf16 at init
                            for halved HBM traffic; accumulation stays f32)
    b:   [dim_out]          bias (kept f32 in the epilogue)
    keep_padded_output: return the lane-dense (B, round_up(dim_out,128))
                            activation so the next layer avoids a de-pad copy.
    """
    B, dim_in = x.shape
    dim_in_w, dim_out = w_t.shape
    assert dim_in_w == dim_in, "weight must be [dim_in, dim_out]"
    out_dtype = x.dtype

    x_item = jnp.dtype(x.dtype).itemsize
    w_item = jnp.dtype(w_t.dtype).itemsize
    out_item = jnp.dtype(out_dtype).itemsize

    # Sublane multiple for the row tile: 8 (f32) / 16 (bf16) / 32 (8-bit).
    sub_m = max(8, 32 // min(x_item, out_item))

    # --- hardware-aware budgets ---------------------------------------------
    vmem_cap = _vmem_capacity_bytes()
    vmem_budget = int(vmem_cap * 0.65)
    if block_m_cap is None:
        block_m_cap = 1024 if vmem_cap >= (96 << 20) else 512
    if block_n_cap is None:
        block_n_cap = 1024 if vmem_cap >= (96 << 20) else 512
    block_m_cap = _round_up(block_m_cap, sub_m)
    block_n_cap = _round_up(block_n_cap, 128)

    # --- pad only the small, reusable parameters -----------------------------
    # x stays untouched: a block last-dim equal to the full dim_in is exempt
    # from the 128 rule, and the MXU pads K internally.
    dim_out_p = _round_up(dim_out, 128)
    w_p = jnp.pad(w_t, ((0, 0), (0, dim_out_p - dim_out)))
    b_p = jnp.pad(b.astype(jnp.float32),
                  (0, dim_out_p - dim_out)).reshape(1, dim_out_p)

    # --- choose tiles: shrink N before M; fall back to K tiling --------------
    bm = min(block_m_cap, _round_up(B, sub_m))
    bn = min(block_n_cap, dim_out_p)

    def simple_est(bm_, bn_):
        return (2 * bm_ * dim_in * x_item        # x (double-buffered)
                + 2 * dim_in * bn_ * w_item      # W (double-buffered)
                + 2 * bn_ * 4                    # bias
                + 2 * bm_ * bn_ * out_item       # out (double-buffered)
                + bm_ * bn_ * 4)                 # f32 matmul result / epilogue

    while simple_est(bm, bn) > vmem_budget and bn > 128:
        bn = max(128, _round_up(bn // 2, 128))
    min_bm = min(256, _round_up(B, sub_m))
    while simple_est(bm, bn) > vmem_budget and bm > min_bm:
        bm = max(min_bm, _round_up(bm // 2, sub_m))

    use_k_tiling = force_k_tiling or (simple_est(bm, bn) > vmem_budget)

    cost = pl.CostEstimate(
        flops=2 * B * dim_in * dim_out_p,
        transcendentals=0,
        bytes_accessed=(B * dim_in * x_item + dim_in * dim_out_p * w_item
                        + dim_out_p * 4 + B * dim_out_p * out_item))

    if not use_k_tiling:
        grid_m = pl.cdiv(B, bm)
        grid_n = pl.cdiv(dim_out_p, bn)

        # v7x megacore: guarantee >= 2 parallel tiles for large batches.
        if grid_m * grid_n == 1 and B >= 512:
            bm = max(256, _round_up(bm // 2, sub_m))
            grid_m = pl.cdiv(B, bm)

        est = simple_est(bm, bn)
        vmem_limit = int(min(vmem_cap - (8 << 20),
                             max(est * 3 // 2 + (2 << 20), 16 << 20)))

        x_bytes = B * dim_in * x_item
        w_bytes = dim_in * dim_out_p * w_item
        if grid_n == 1 or grid_m * w_bytes <= grid_n * x_bytes:
            # N innermost: x streamed once, W re-streamed per row tile.
            grid = (grid_m, grid_n)
            x_map = lambda i, j: (i, 0)
            w_map = lambda i, j: (0, j)
            b_map = lambda i, j: (0, j)
            o_map = lambda i, j: (i, j)
        else:
            # M innermost: W streamed once, x re-streamed per column tile.
            grid = (grid_n, grid_m)
            x_map = lambda j, i: (i, 0)
            w_map = lambda j, i: (0, j)
            b_map = lambda j, i: (0, j)
            o_map = lambda j, i: (i, j)

        out_p = pl.pallas_call(
            _basic_block_kernel,
            out_shape=jax.ShapeDtypeStruct((B, dim_out_p), out_dtype),
            grid_spec=pltpu.PrefetchScalarGridSpec(
                num_scalar_prefetch=0,
                grid=grid,
                in_specs=[
                    pl.BlockSpec((bm, dim_in), x_map),
                    pl.BlockSpec((dim_in, bn), w_map),
                    pl.BlockSpec((1, bn), b_map),
                ],
                out_specs=pl.BlockSpec((bm, bn), o_map),
            ),
            compiler_params=pltpu.CompilerParams(
                dimension_semantics=("parallel", "parallel"),
                vmem_limit_bytes=vmem_limit),
            cost_estimate=cost,
        )(x, w_p, b_p)
    else:
        # ---- K-tiled path: f32 accumulator, bias+ReLU at the last K step ----
        bk = 128 if force_k_tiling else min(2048, _round_up(dim_in, 128))

        def k_est(bm_, bn_, bk_):
            return (2 * bm_ * bk_ * x_item + 2 * bk_ * bn_ * w_item
                    + 2 * bn_ * 4 + 2 * bm_ * bn_ * out_item
                    + bm_ * bn_ * 4)             # f32 accumulator scratch

        while k_est(bm, bn, bk) > vmem_budget and bk > 512:
            bk = max(512, _round_up(bk // 2, 128))
        while k_est(bm, bn, bk) > vmem_budget and bn > 128:
            bn = max(128, _round_up(bn // 2, 128))
        while k_est(bm, bn, bk) > vmem_budget and bm > sub_m:
            bm = max(sub_m, _round_up(bm // 2, sub_m))

        dim_in_kp = _round_up(dim_in, bk)
        # K-pad is unavoidable here (128-aligned K blocks); only hit for very
        # large dim_in where the pad is cheap relative to the matmul.
        x_k = jnp.pad(x, ((0, 0), (0, dim_in_kp - dim_in)))
        w_k = jnp.pad(w_t, ((0, dim_in_kp - dim_in), (0, dim_out_p - dim_out)))

        grid_m = pl.cdiv(B, bm)
        grid_n = pl.cdiv(dim_out_p, bn)
        grid_k = dim_in_kp // bk

        est = k_est(bm, bn, bk)
        vmem_limit = int(min(vmem_cap - (8 << 20),
                             max(est * 3 // 2 + (2 << 20), 16 << 20)))

        out_p = pl.pallas_call(
            _basic_block_kernel_ktiled,
            out_shape=jax.ShapeDtypeStruct((B, dim_out_p), out_dtype),
            grid_spec=pltpu.PrefetchScalarGridSpec(
                num_scalar_prefetch=0,
                grid=(grid_m, grid_n, grid_k),
                in_specs=[
                    pl.BlockSpec((bm, bk), lambda i, j, k: (i, k)),
                    pl.BlockSpec((bk, bn), lambda i, j, k: (k, j)),
                    pl.BlockSpec((1, bn), lambda i, j, k: (0, j)),
                ],
                out_specs=pl.BlockSpec((bm, bn), lambda i, j, k: (i, j)),
                scratch_shapes=[pltpu.VMEM((bm, bn), jnp.float32)],
            ),
            compiler_params=pltpu.CompilerParams(
                dimension_semantics=("parallel", "parallel", "arbitrary"),
                vmem_limit_bytes=vmem_limit),
            cost_estimate=cost,
        )(x_k, w_k, b_p)

    if keep_padded_output or dim_out_p == dim_out:
        # Chained BasicBlocks can consume the padded activation directly (the
        # extra K rows of the next layer's W are zero) — no de-pad copy.
        return out_p
    return out_p[:, :dim_out]


def init_basic_block_params(key, dim_in, dim_out, bias=True,
                            dtype=jnp.float32):
    """Init mirroring nn.Linear defaults; set dtype=jnp.bfloat16 to store the
    weight in bf16 once (amortized cast). Bias stays f32 (f32 epilogue)."""
    kw, kb = jax.random.split(key)
    bound = 1.0 / jnp.sqrt(jnp.float32(dim_in))
    w_t = jax.random.uniform(kw, (dim_in, dim_out), jnp.float32,
                             -bound, bound).astype(dtype)
    if bias:
        b = jax.random.uniform(kb, (dim_out,), jnp.float32, -bound, bound)
    else:
        b = jnp.zeros((dim_out,), jnp.float32)
    return w_t, b


if __name__ == "__main__":
    key = jax.random.PRNGKey(0)
    k1, k2, k3, k4, k5 = jax.random.split(key, 5)

    # --- canonical small case: dim_in=32 -> dim_out=64, batch=8 --------------
    dim_in, dim_out, batch = 32, 64, 8
    x = jax.random.normal(k1, (batch, dim_in), jnp.float32)
    w_t, b = init_basic_block_params(k2, dim_in, dim_out, bias=True)
    out = jax.block_until_ready(basic_block_forward(x, w_t, b))
    ref = jnp.maximum(x @ w_t + b, 0.0)
    assert out.shape == (batch, dim_out)
    assert jnp.allclose(out, ref, atol=1e-5, rtol=1e-5)

    # --- non-multiple batch (partial row tile) --------------------------------
    x2 = jax.random.normal(k3, (300, dim_in), jnp.float32)
    ref2 = jnp.maximum(x2 @ w_t + b, 0.0)
    out2 = jax.block_until_ready(basic_block_forward(x2, w_t, b))
    assert out2.shape == (300, dim_out)
    assert jnp.allclose(out2, ref2, atol=1e-5, rtol=1e-5)

    # --- bf16 operands (cast once outside the call; f32 accumulate) ----------
    x2_bf = x2.astype(jnp.bfloat16)
    w_bf = w_t.astype(jnp.bfloat16)
    out_bf = jax.block_until_ready(basic_block_forward(x2_bf, w_bf, b))
    assert jnp.allclose(out_bf.astype(jnp.float32), ref2, atol=5e-2, rtol=5e-2)

    # --- tiled N axis (exercises grid-order selection / W-resident path) -----
    dim_in3, dim_out3, batch3 = 48, 256, 64
    x3 = jax.random.normal(k4, (batch3, dim_in3), jnp.float32)
    w3, b3 = init_basic_block_params(k5, dim_in3, dim_out3)
    out3 = jax.block_until_ready(
        basic_block_forward(x3, w3, b3, block_n_cap=128))
    ref3 = jnp.maximum(x3 @ w3 + b3, 0.0)
    assert jnp.allclose(out3, ref3, atol=1e-5, rtol=1e-5)

    # --- K-tiled accumulator path (forced; auto-used for very large dim_in) --
    dim_in4, dim_out4, batch4 = 256, 128, 32
    x4 = jax.random.normal(k1, (batch4, dim_in4), jnp.float32)
    w4, b4 = init_basic_block_params(k2, dim_in4, dim_out4)
    out4 = jax.block_until_ready(
        basic_block_forward(x4, w4, b4, force_k_tiling=True))
    ref4 = jnp.maximum(x4 @ w4 + b4, 0.0)
    assert jnp.allclose(out4, ref4, atol=1e-4, rtol=1e-4)

    print("KERNEL_OK")
</pallas_src>

<mosaic_0001>
module attributes {stable_mosaic.version = 11 : i64} {
  func.func @_basic_block_kernel(%arg0: i32, %arg1: i32, %arg2: memref<8x32xf32, #tpu.memory_space<vmem>>, %arg3: memref<32x128xf32, #tpu.memory_space<vmem>>, %arg4: memref<1x128xf32, #tpu.memory_space<vmem>>, %arg5: memref<8x128xf32, #tpu.memory_space<vmem>>) attributes {dimension_semantics = [#tpu.dimension_semantics<parallel>, #tpu.dimension_semantics<parallel>], iteration_bounds = array<i64: 1, 1>, scalar_prefetch = 0 : i64, scratch_operands = 0 : i64, tpu.core_type = #tpu.core_type<tc>, window_params = [{transform_indices = @transform_0, window_bounds = array<i64: 8, 32>}, {transform_indices = @transform_1, window_bounds = array<i64: 32, 128>}, {transform_indices = @transform_2, window_bounds = array<i64: 1, 128>}, {transform_indices = @transform_3, window_bounds = array<i64: 8, 128>}]} {
    %c0 = arith.constant 0 : index
    %c0_0 = arith.constant 0 : index
    %0 = vector.load %arg2[%c0, %c0_0] : memref<8x32xf32, #tpu.memory_space<vmem>>, vector<8x32xf32>
    %c0_1 = arith.constant 0 : index
    %c0_2 = arith.constant 0 : index
    %1 = vector.load %arg3[%c0_1, %c0_2] : memref<32x128xf32, #tpu.memory_space<vmem>>, vector<32x128xf32>
    %cst = arith.constant dense<0.000000e+00> : vector<8x128xf32>
    %2 = tpu.matmul %0, %1, %cst {dimension_numbers = #tpu.dot_dimension_numbers<[1], [0], [0], [1], [0, 0, 1, 1], [], []>} : vector<8x32xf32>, vector<32x128xf32>, vector<8x128xf32> -> vector<8x128xf32>
    %c0_3 = arith.constant 0 : index
    %c0_4 = arith.constant 0 : index
    %3 = vector.load %arg4[%c0_3, %c0_4] : memref<1x128xf32, #tpu.memory_space<vmem>>, vector<1x128xf32>
    %4 = vector.broadcast %3 : vector<1x128xf32> to vector<8x128xf32>
    %5 = arith.addf %2, %4 : vector<8x128xf32>
    %cst_5 = arith.constant 0.000000e+00 : f32
    %6 = vector.broadcast %cst_5 : f32 to vector<8x128xf32>
    %7 = arith.maximumf %5, %6 : vector<8x128xf32>
    %c0_6 = arith.constant 0 : index
    %c0_7 = arith.constant 0 : index
    %8 = vector.load %arg5[%c0_6, %c0_7] : memref<8x128xf32, #tpu.memory_space<vmem>>, vector<8x128xf32>
    tpu.vector_store %arg5[%c0_6, %c0_7], %7 {strides = array<i32>} : memref<8x128xf32, #tpu.memory_space<vmem>>, vector<8x128xf32>,
    return
  }
  func.func @transform_0(%arg0: i32, %arg1: i32) -> (i32, i32) {
    %c0_i32 = arith.constant 0 : i32
    %c0_i32_0 = arith.constant 0 : i32
    return %arg0, %c0_i32 : i32, i32
  }
  func.func @transform_1(%arg0: i32, %arg1: i32) -> (i32, i32) {
    %c0_i32 = arith.constant 0 : i32
    %c0_i32_0 = arith.constant 0 : i32
    return %c0_i32, %arg1 : i32, i32
  }
  func.func @transform_2(%arg0: i32, %arg1: i32) -> (i32, i32) {
    %c0_i32 = arith.constant 0 : i32
    %c0_i32_0 = arith.constant 0 : i32
    return %c0_i32, %arg1 : i32, i32
  }
  func.func @transform_3(%arg0: i32, %arg1: i32) -> (i32, i32) {
    %c0_i32 = arith.constant 0 : i32
    return %arg0, %arg1 : i32, i32
  }
}

</mosaic_0001>

<bundles_post_ra>
// kernel: basic_block_forward.1
= control target key start
LH: loop header
LB: loop body
LE: loop exit
PB: predicated region body
PF: predicated region fallthrough
CT: control target
= control target key end

     0   :  { %v169_v3 = vmov 0.0|0.0   ;;  %vm170_vm0 = vmmov 0   ;;  %v171_v6 = vmov 0.0   ;;  %s223_s0 = inlined_call_operand.vmem [shape: f32[8,32], index: 0, kind: input, shape index: {}]   ;;  %s224_s1 = inlined_call_operand.vmem [shape: f32[32,128], index: 1, kind: input, shape index: {}]   ;;  %s225_s2 = inlined_call_operand.vmem [shape: f32[1,128], index: 2, kind: input, shape index: {}]   ;;  %s226_s3 = inlined_call_operand.hbm [shape: f32[8,128], index: 3, kind: output, shape index: {}]  }
   0x1   :  { %v16_v0 = vld [vmem:[%s224_s1] sm:$0xff]  ;;  %v17_v1 = vld [vmem:[%s224_s1 + $0x8] sm:$0xff]  ;;  %v18_v2 = vld [vmem:[%s224_s1 + $0x10] sm:$0xff]  ;;  %135 = vmatprep.subr.bf16.mxu0 %v169_v3  ;;  %132 = vmatprep.mubr.msk.f32.mxu0 %vm170_vm0, %v171_v6 }
   0x2   :  { %v136_v4 = vpack.c.bf16 %v17_v1, %v16_v0  ;;  %v19_v5 = vld [vmem:[%s224_s1 + $0x18] sm:$0xff] }
   0x3   :  { %8 = vsyncpa [#allocation3], 0  ;;  %v139_v7 = vpack.c.bf16 %v19_v5, %v18_v2  ;;  %v15_v8 = vld [vmem:[%s223_s0] sm:$0xff]  ;;  %vm27_vm1 = vcmask 261120   ;;  %s172_s1 = smov [#allocation2]  }
   0x4   :  { %137 = vmatpush3.bf16.msra.mxu0 %v136_v4  ;;  %v117_v9 = vld [vmem:[%s225_s2] ss:$0 sm:$0xff]  ;;  %s109_s24 = sshll.u32 %s172_s1, 4  ;;  %s110_s24 = int_to_ptr.vmem [resolvable:$true] %s109_s24 }
   0x5   :  { %138 = vmatprep.subr.bf16.mxu0 %v169_v3  ;;  %s145_s25 = scalar_lea.vmem %s110_s24, 128  ;;  %p150_p1 = scmp.lt.s32.totalorder %s110_s24, %s110_s24 }
   0x6   :  { %p146_p0 = scmp.ne.s32.totalorder %s110_s24, %s145_s25  ;;  %p151_p2 = scmp.lt.s32.totalorder %s145_s25, %s145_s25 }
   0x8   :  { %140 = vmatpush3.bf16.msra.mxu0 %v139_v7  ;;  %p152_p3 = por %p151_p2, %p150_p1 }
   0xa   :  { %p153_p4 = pnand %p152_p3, %p146_p0 }
   0xb   :  { %133 = vmatmul.mubr.msk.f32.vlgmr.msra.gmra.mrb[0].mxu0 %vm27_vm1, %v15_v8 }
  0xde   :  { %v97_v10 = vpop.f32.mrb[0].mxu0 }
  0xdf   :  { %v98_v11 = vadd.f32 %v117_v9, %v97_v10  ;;  %v134_v12 = vpop.f32.mrb[1].mxu0 }
  0xe1   :  { %v101_v13 = vmax.f32 %v98_v11, 0.0 }
  0xe3   :  { %102 = vst [vmem:[#allocation2] sm:$0xff] %v101_v13 }
  0xe4   :  { %156 = shalt.err (!%p153_p4)
}
  0xe5   :  { %s157_s27 = scalar_lea.hbm %s226_s3, 128 }
  0xe6   :  { %p158_p5 = scmp.ne.s32.totalorder %s226_s3, %s157_s27  ;;  %p161_p6 = scmp.lt.u32.totalorder %s157_s27, %s226_s3 }
  0xe8   :  { %p163_p7 = pnand %p161_p6, %p158_p5 }
  0xea   :  { %166 = shalt.err (!%p163_p7)
}
  0xeb   :  { %112 = dma.vmem_to_hbm [thread:$0]  %s110_s24, 128, %s226_s3, [#allocation3]  }
  0xec   :  { %167 = dma.done.wait [#allocation3], 128  }
  0xed   :  { %168 = vsyncadd [#allocation3], 4294967168 }
  0xee   :  { %116 = vsyncpa [#allocation3], 1 }

</bundles_post_ra>
